<compile_context>
chip_gen: v7x
topology: tpu7x:2x2x1
jax: 0.10.0
libtpu: 0.0.40
codegen_flags: <defaults>
</compile_context>

<pallas_src>
import functools
import math

import jax
import jax.numpy as jnp
from jax.experimental import pallas as pl
from jax.experimental.pallas import tpu as pltpu


def _cdiv(a, b):
    return -(-a // b)


def _round_up(x, m):
    return ((x + m - 1) // m) * m


def _focal_pow(x, gamma):
    """x**gamma, exact repeated-multiply for small integer gamma (no exp/log)."""
    g = float(gamma)
    if g.is_integer() and 0.0 <= g <= 8.0:
        n = int(g)
        if n == 0:
            return jnp.ones_like(x)
        out = x
        for _ in range(n - 1):
            out = out * x
        return out
    # Non-integer gamma fallback: one extra exp+log per element.
    return jnp.exp(gamma * jnp.log(jnp.maximum(x, 1e-30)))


def _focal_kernel(x_ref, t_ref, sums_ref, cnt_ref, *, gamma, eps, onehot_eps,
                  hw, tm, t_per_split, cutoff, any_masked):
    """Per-tile hot path.

    x_ref:    (C, TM) logits tile (any float dtype; widened to f32 here)
    t_ref:    (1, TM) integer labels tile
    sums_ref: (C, 1)  f32 accumulator of sum_pixels one_hot_eps*(1-p)^g*log(p)
    cnt_ref:  (C, 1)  f32 accumulator of per-class pixel counts
    """
    j = pl.program_id(2)   # reduction axis (tiles of the pixel axis)

    @pl.when(j == 0)
    def _():
        sums_ref[...] = jnp.zeros_like(sums_ref)
        cnt_ref[...] = jnp.zeros_like(cnt_ref)

    x = x_ref[...].astype(jnp.float32)        # (C, TM); in-kernel bf16 -> f32
    t = t_ref[...].astype(jnp.int32)          # (1, TM)

    # softmax over the class (sublane) axis  ==  F.softmax(input, dim=1)
    m = jnp.max(x, axis=0, keepdims=True)     # (1, TM)
    xs = x - m
    e = jnp.exp(xs)                           # one exp / element
    s = jnp.sum(e, axis=0, keepdims=True)     # (1, TM)
    # EUP-approx reciprocal + one Newton step (~2^-24 rel err): frees the
    # exact-divide EUP sequence on v5e, neutral elsewhere.
    inv = pl.reciprocal(s, approx=True)
    inv = inv * (2.0 - s * inv)
    log_s = jnp.log(s)                        # one log / pixel
    p = e * inv + eps                         # input_soft = softmax + eps
    # log(softmax+eps) ~= max(log-softmax, log(eps)): exact to <= eps/p when
    # p >> eps and clamped at the reference's saturation point otherwise.
    log_floor = math.log(eps) if eps > 0.0 else -80.0
    log_p = jnp.maximum(xs - log_s, log_floor)

    # one-hot (+ 1e-6) exactly like label_to_one_hot_label; labels >= C
    # (ignore_index and garbage lanes) simply get no "1" in any kept channel.
    c_idx = jax.lax.broadcasted_iota(jnp.int32, x.shape, 0)   # (C, TM)
    indicator = jnp.where(t == c_idx, 1.0, 0.0)               # reused for counts
    one_hot = indicator + onehot_eps

    # focal/(-alpha) = (1-p)^gamma * log(p); (-alpha) is applied in the wrapper.
    # (torch.nan_to_num(focal) in the original is not assigned -> no-op, skipped)
    contrib = one_hot * (_focal_pow(1.0 - p, gamma) * log_p)  # (C, TM)

    if any_masked:
        tile_idx = pl.program_id(1) * t_per_split + j

        @pl.when(tile_idx < cutoff)           # full, fully in-bounds tiles
        def _():
            sums_ref[...] += jnp.sum(contrib, axis=1, keepdims=True)
            cnt_ref[...] += jnp.sum(indicator, axis=1, keepdims=True)

        @pl.when(tile_idx >= cutoff)          # ragged last tile / empty steps
        def _():
            lane = jax.lax.broadcasted_iota(jnp.int32, (1, tm), 1)
            valid = (lane + tile_idx * tm) < hw        # (1, TM) bool
            # where-select (not multiply): garbage lanes may hold NaN/Inf and
            # garbage labels, so both the loss and the counts are masked.
            sums_ref[...] += jnp.sum(jnp.where(valid, contrib, 0.0),
                                     axis=1, keepdims=True)
            cnt_ref[...] += jnp.sum(jnp.where(valid, indicator, 0.0),
                                    axis=1, keepdims=True)
    else:
        sums_ref[...] += jnp.sum(contrib, axis=1, keepdims=True)
        cnt_ref[...] += jnp.sum(indicator, axis=1, keepdims=True)


def _vmem_budget_bytes():
    """Per-core scoped-VMEM budget with headroom (v7x ~48 MiB, v5e/v6e ~96 MiB)."""
    phys = 64 << 20   # conservative fallback (v7x physical)
    try:
        info = pltpu.get_tpu_info()
        for name in ("vmem_capacity_bytes", "vmem_size_bytes", "vmem_bytes"):
            val = getattr(info, name, None)
            if isinstance(val, int) and (16 << 20) <= val <= (128 << 20):
                phys = val
                break
    except Exception:
        pass
    return min(96 << 20, (phys * 3) // 4)


def focal_effective_loss_pallas(logits, target, *, alpha=0.5, gamma=2.0,
                                reduction="mean", eps=1e-8, ignore_index=30,
                                balancing=True, max_tm=None):
    """Matches Focal_Effective_Loss(alpha, gamma, reduction, eps, ignore_index,
    balancing).forward(logits, target) for reduction in {'mean','sum'}.

    ignore_index semantics: labels >= C produce an all-zero one-hot row (the
    original keeps only the first C channels of the scatter), so they carry no
    loss/count; the 'mean' divisor still includes them, as in the original.
    """
    # TODO(synk): per-class (np.ndarray / tensor) alpha is not supported; scalar only.
    del ignore_index
    N, C, H, W = logits.shape
    HW = H * W

    # Free layout change: NCHW -> (N, C, H*W).  No transpose, no dtype upcast,
    # no padding; bf16 logits DMA as bf16 and are widened inside the kernel.
    x_3d = logits.reshape(N, C, HW)
    if (not jnp.issubdtype(target.dtype, jnp.integer)) or target.dtype.itemsize > 4:
        target = target.astype(jnp.int32)     # keep narrow int labels as-is
    t_3d = target.reshape(N, 1, HW)

    # ---- tile sizing -------------------------------------------------------
    vmem_limit = _vmem_budget_bytes()
    # ~512 B of VMEM per pixel-lane: double-buffered logits+labels blocks plus
    # the live f32 temporaries of the elementwise chain; keep 25% spare.
    tm_cap = ((vmem_limit * 3) // 4) // 512
    target_tm = max(8 * 1024, min(128 * 1024, (tm_cap // 1024) * 1024))
    if max_tm is not None:
        target_tm = max(128, min(target_tm, (max_tm // 128) * 128))

    if HW <= target_tm:
        # Whole pixel axis in a single block (block == full dim is always legal).
        S, TM, Ttot, T = 1, HW, 1, 1
    else:
        # 2-way pixel split only when the batch axis can't feed both v7x
        # TensorCores; harmless on single-core chips (no padding is added).
        S = 2 if N == 1 else 1
        TM = target_tm                         # multiple of 128
        Ttot = _cdiv(HW, TM)                   # real tiles over the pixel axis
        T = _cdiv(Ttot, S)                     # tiles per split (reduction axis)

    n_empty = S * T - Ttot                     # clamped, fully-masked grid steps
    ragged = (HW % TM) != 0
    any_masked = ragged or (n_empty > 0)
    cutoff = (Ttot - 1) if ragged else Ttot    # first tile index needing a mask
    last_tile = Ttot - 1

    def _pix(s, j):
        idx = s * T + j
        return jnp.minimum(idx, last_tile) if n_empty > 0 else idx

    kernel = functools.partial(
        _focal_kernel,
        gamma=float(gamma),
        eps=float(eps),              # focal eps (module default 1e-8)
        onehot_eps=1e-6,             # label_to_one_hot_label default eps
        hw=HW, tm=TM, t_per_split=T, cutoff=cutoff, any_masked=any_masked)

    sums, cnts = pl.pallas_call(
        kernel,
        out_shape=(jax.ShapeDtypeStruct((N * S, C, 1), jnp.float32),
                   jax.ShapeDtypeStruct((N * S, C, 1), jnp.float32)),
        grid_spec=pltpu.PrefetchScalarGridSpec(
            num_scalar_prefetch=0,
            grid=(N, S, T),
            in_specs=[pl.BlockSpec((None, C, TM), lambda n, s, j: (n, 0, _pix(s, j))),
                      pl.BlockSpec((None, 1, TM), lambda n, s, j: (n, 0, _pix(s, j)))],
            out_specs=[pl.BlockSpec((None, C, 1), lambda n, s, j: (n * S + s, 0, 0)),
                       pl.BlockSpec((None, C, 1), lambda n, s, j: (n * S + s, 0, 0))]),
        compiler_params=pltpu.CompilerParams(
            dimension_semantics=("parallel", "parallel", "arbitrary"),
            vmem_limit_bytes=int(vmem_limit)),
    )(x_3d, t_3d)

    # Per-(n, s)-partition partial sums -> global per-class sums.
    per_class_sum = jnp.sum(sums[:, :, 0], axis=0)   # (C,)
    per_class_cnt = jnp.sum(cnts[:, :, 0], axis=0)   # (C,)

    # balance_weights_f(flags='effective_num') -- tiny scalar glue in plain JAX
    bal_eps = 1e-3
    total = jnp.sum(per_class_cnt)
    beta = (total - 1.0) / total
    effective_num = (1.0 - jnp.power(beta, per_class_cnt) + bal_eps) / (1.0 - beta)
    weights = 1.0 / effective_num
    weights = weights * (C / jnp.sum(weights))

    if balancing:
        # loss_tmp = (one_hot * w_c) * focal, shape (N, C, H, W)
        total_loss = (-float(alpha)) * jnp.sum(weights * per_class_sum)
        n_mean_elems = N * C * H * W
    else:
        # loss_tmp = sum_c one_hot * focal, shape (N, H, W)
        total_loss = (-float(alpha)) * jnp.sum(per_class_sum)
        n_mean_elems = N * H * W

    if reduction == "mean":
        loss = total_loss / n_mean_elems        # mean(mean(loss_tmp, dim=0))
    elif reduction == "sum":
        loss = total_loss / N                   # sum(mean(loss_tmp, dim=0))
    else:
        # TODO(synk): reduction='none' returns a full (N,[C,]H,W) tensor; only
        # scalar reductions are implemented here.
        raise NotImplementedError(f"Invalid/unsupported reduction: {reduction}")

    return loss, weights


def focal_effective_loss_ref(logits, target, *, alpha=0.5, gamma=2.0, eps=1e-8,
                             reduction="mean", balancing=True):
    """Pure-JAX reference implementing the original math directly."""
    N, C, H, W = logits.shape
    p = jax.nn.softmax(logits.astype(jnp.float32), axis=1) + eps
    one_hot = jax.nn.one_hot(target, C, axis=1, dtype=jnp.float32) + 1e-6
    focal = -alpha * jnp.power(1.0 - p, gamma) * jnp.log(p)

    cnts = jnp.sum((one_hot >= 1.0).astype(jnp.float32), axis=(0, 2, 3))
    total = jnp.sum(cnts)
    beta = (total - 1.0) / total
    eff = (1.0 - jnp.power(beta, cnts) + 1e-3) / (1.0 - beta)
    w = 1.0 / eff
    w = w * (C / jnp.sum(w))

    if balancing:
        loss_tmp = (one_hot * w.reshape(1, C, 1, 1)) * focal
    else:
        loss_tmp = jnp.sum(one_hot * focal, axis=1)
    if reduction == "mean":
        return jnp.mean(jnp.mean(loss_tmp, axis=0))
    return jnp.sum(jnp.mean(loss_tmp, axis=0))


if __name__ == "__main__":
    key = jax.random.PRNGKey(0)
    k1, k2, k3, k4, k5, k6 = jax.random.split(key, 6)
    C = 4                                    # balance_weights_f assumes 4 classes

    # Case 1: aligned H*W, batch > 1 (single full-dim tile per image).
    N, H, W = 2, 16, 16
    logits = jax.random.normal(k1, (N, C, H, W), dtype=jnp.float32)
    target = jax.random.randint(k2, (N, H, W), 0, C, dtype=jnp.int32)
    loss, _ = focal_effective_loss_pallas(logits, target, alpha=0.5, gamma=2.0)
    loss = jax.block_until_ready(loss)
    ref = focal_effective_loss_ref(logits, target, alpha=0.5, gamma=2.0)
    assert jnp.allclose(loss, ref, rtol=1e-4, atol=1e-6), (float(loss), float(ref))

    # Case 2: ragged pixel axis + 2-way split + multi-tile reduction
    # (max_tm forced small so the masked-last-tile path is exercised).
    N2, H2, W2 = 1, 40, 40                   # HW=1600 -> 3 full tiles + ragged tile
    logits2 = jax.random.normal(k3, (N2, C, H2, W2), dtype=jnp.float32)
    target2 = jax.random.randint(k4, (N2, H2, W2), 0, C, dtype=jnp.int32)
    loss2, _ = focal_effective_loss_pallas(logits2, target2, max_tm=512)
    loss2 = jax.block_until_ready(loss2)
    ref2 = focal_effective_loss_ref(logits2, target2)
    assert jnp.allclose(loss2, ref2, rtol=1e-4, atol=1e-6), (float(loss2), float(ref2))

    # Case 3: odd tile count with a clamped, fully-masked (empty) grid step.
    N3, H3, W3 = 1, 40, 32                   # HW=1280 -> Ttot=3, S=2 -> 1 empty step
    logits3 = jax.random.normal(k5, (N3, C, H3, W3), dtype=jnp.float32)
    target3 = jax.random.randint(k6, (N3, H3, W3), 0, C, dtype=jnp.int32)
    loss3, _ = focal_effective_loss_pallas(logits3, target3, max_tm=512)
    loss3 = jax.block_until_ready(loss3)
    ref3 = focal_effective_loss_ref(logits3, target3)
    assert jnp.allclose(loss3, ref3, rtol=1e-4, atol=1e-6), (float(loss3), float(ref3))

    print("KERNEL_OK")
</pallas_src>

<mosaic_0001>
module attributes {stable_mosaic.version = 11 : i64} {
  func.func @_focal_kernel(%arg0: i32, %arg1: i32, %arg2: i32, %arg3: memref<1x4x256xf32, #tpu.memory_space<vmem>>, %arg4: memref<1x1x256xi32, #tpu.memory_space<vmem>>, %arg5: memref<1x4x1xf32, #tpu.memory_space<vmem>>, %arg6: memref<1x4x1xf32, #tpu.memory_space<vmem>>) attributes {dimension_semantics = [#tpu.dimension_semantics<parallel>, #tpu.dimension_semantics<parallel>, #tpu.dimension_semantics<arbitrary>], iteration_bounds = array<i64: 2, 1, 1>, scalar_prefetch = 0 : i64, scratch_operands = 0 : i64, tpu.core_type = #tpu.core_type<tc>, window_params = [{transform_indices = @transform_0, window_bounds = array<i64: 1, 4, 256>}, {transform_indices = @transform_1, window_bounds = array<i64: 1, 1, 256>}, {transform_indices = @transform_2, window_bounds = array<i64: 1, 4, 1>}, {transform_indices = @transform_3, window_bounds = array<i64: 1, 4, 1>}]} {
    %c0_i32 = arith.constant 0 : i32
    %0 = arith.cmpi eq, %arg2, %c0_i32 : i32
    %1 = arith.extui %0 : i1 to i32
    %c0_i32_0 = arith.constant 0 : i32
    %2 = arith.cmpi ne, %1, %c0_i32_0 : i32
    scf.if %2 {
      %cst_28 = arith.constant 0.000000e+00 : f32
      %57 = vector.broadcast %cst_28 : f32 to vector<4x1xf32>
      %c0_29 = arith.constant 0 : index
      %c0_30 = arith.constant 0 : index
      %c0_31 = arith.constant 0 : index
      %58 = vector.load %arg5[%c0_29, %c0_30, %c0_31] : memref<1x4x1xf32, #tpu.memory_space<vmem>>, vector<1x4x1xf32>
      %59 = vector.shape_cast %58 : vector<1x4x1xf32> to vector<4x1xf32>
      %60 = vector.shape_cast %57 : vector<4x1xf32> to vector<1x4x1xf32>
      tpu.vector_store %arg5[%c0_29, %c0_30, %c0_31], %60 {strides = array<i32>} : memref<1x4x1xf32, #tpu.memory_space<vmem>>, vector<1x4x1xf32>,
      %cst_32 = arith.constant 0.000000e+00 : f32
      %61 = vector.broadcast %cst_32 : f32 to vector<4x1xf32>
      %c0_33 = arith.constant 0 : index
      %c0_34 = arith.constant 0 : index
      %c0_35 = arith.constant 0 : index
      %62 = vector.load %arg6[%c0_33, %c0_34, %c0_35] : memref<1x4x1xf32, #tpu.memory_space<vmem>>, vector<1x4x1xf32>
      %63 = vector.shape_cast %62 : vector<1x4x1xf32> to vector<4x1xf32>
      %64 = vector.shape_cast %61 : vector<4x1xf32> to vector<1x4x1xf32>
      tpu.vector_store %arg6[%c0_33, %c0_34, %c0_35], %64 {strides = array<i32>} : memref<1x4x1xf32, #tpu.memory_space<vmem>>, vector<1x4x1xf32>,
    } else {
    }
    %c0 = arith.constant 0 : index
    %c0_1 = arith.constant 0 : index
    %c0_2 = arith.constant 0 : index
    %3 = vector.load %arg3[%c0, %c0_1, %c0_2] : memref<1x4x256xf32, #tpu.memory_space<vmem>>, vector<1x4x256xf32>
    %4 = vector.shape_cast %3 : vector<1x4x256xf32> to vector<4x256xf32>
    %c0_3 = arith.constant 0 : index
    %c0_4 = arith.constant 0 : index
    %c0_5 = arith.constant 0 : index
    %5 = vector.load %arg4[%c0_3, %c0_4, %c0_5] : memref<1x1x256xi32, #tpu.memory_space<vmem>>, vector<1x1x256xi32>
    %6 = vector.shape_cast %5 : vector<1x1x256xi32> to vector<1x256xi32>
    %cst = arith.constant dense<0xFF800000> : vector<256xf32>
    %7 = vector.multi_reduction <maximumf>, %4, %cst [0] : vector<4x256xf32> to vector<256xf32>
    %8 = vector.shape_cast %7 : vector<256xf32> to vector<1x256xf32>
    %9 = vector.broadcast %8 : vector<1x256xf32> to vector<4x256xf32>
    %10 = arith.subf %4, %9 : vector<4x256xf32>
    %11 = math.exp %10 : vector<4x256xf32>
    %cst_6 = arith.constant dense<0.000000e+00> : vector<256xf32>
    %12 = vector.multi_reduction <add>, %11, %cst_6 [0] : vector<4x256xf32> to vector<256xf32>
    %13 = vector.shape_cast %12 : vector<256xf32> to vector<1x256xf32>
    %14 = tpu.reciprocal %13 {approx = true} : vector<1x256xf32> -> vector<1x256xf32>
    %15 = arith.mulf %13, %14 : vector<1x256xf32>
    %cst_7 = arith.constant 2.000000e+00 : f32
    %16 = vector.broadcast %cst_7 : f32 to vector<1x256xf32>
    %17 = arith.subf %16, %15 : vector<1x256xf32>
    %18 = arith.mulf %14, %17 : vector<1x256xf32>
    %19 = math.log %13 : vector<1x256xf32>
    %20 = vector.broadcast %18 : vector<1x256xf32> to vector<4x256xf32>
    %21 = arith.mulf %11, %20 : vector<4x256xf32>
    %cst_8 = arith.constant 9.99999993E-9 : f32
    %22 = vector.broadcast %cst_8 : f32 to vector<4x256xf32>
    %23 = arith.addf %21, %22 : vector<4x256xf32>
    %24 = vector.broadcast %19 : vector<1x256xf32> to vector<4x256xf32>
    %25 = arith.subf %10, %24 : vector<4x256xf32>
    %cst_9 = arith.constant -18.420681 : f32
    %26 = vector.broadcast %cst_9 : f32 to vector<4x256xf32>
    %27 = arith.maximumf %25, %26 : vector<4x256xf32>
    %28 = tpu.iota {dimensions = array<i32: 0>} : vector<4x256xi32>
    %29 = vector.broadcast %6 : vector<1x256xi32> to vector<4x256xi32>
    %30 = arith.cmpi eq, %29, %28 : vector<4x256xi32>
    %cst_10 = arith.constant 1.000000e+00 : f32
    %cst_11 = arith.constant 0.000000e+00 : f32
    %31 = vector.broadcast %cst_10 : f32 to vector<4x256xf32>
    %32 = vector.broadcast %cst_11 : f32 to vector<4x256xf32>
    %33 = arith.select %30, %31, %32 : vector<4x256xi1>, vector<4x256xf32>
    %cst_12 = arith.constant 9.99999997E-7 : f32
    %34 = vector.broadcast %cst_12 : f32 to vector<4x256xf32>
    %35 = arith.addf %33, %34 : vector<4x256xf32>
    %cst_13 = arith.constant 1.000000e+00 : f32
    %36 = vector.broadcast %cst_13 : f32 to vector<4x256xf32>
    %37 = arith.subf %36, %23 : vector<4x256xf32>
    %38 = arith.mulf %37, %37 : vector<4x256xf32>
    %39 = arith.mulf %38, %27 : vector<4x256xf32>
    %40 = arith.mulf %35, %39 : vector<4x256xf32>
    %c0_14 = arith.constant 0 : index
    %c0_15 = arith.constant 0 : index
    %c0_16 = arith.constant 0 : index
    %41 = vector.load %arg5[%c0_14, %c0_15, %c0_16] : memref<1x4x1xf32, #tpu.memory_space<vmem>>, vector<1x4x1xf32>
    %42 = vector.shape_cast %41 : vector<1x4x1xf32> to vector<4x1xf32>
    %cst_17 = arith.constant dense<0.000000e+00> : vector<4xf32>
    %43 = vector.multi_reduction <add>, %40, %cst_17 [1] : vector<4x256xf32> to vector<4xf32>
    %44 = vector.shape_cast %43 : vector<4xf32> to vector<4x1xf32>
    %45 = arith.addf %42, %44 : vector<4x1xf32>
    %c0_18 = arith.constant 0 : index
    %c0_19 = arith.constant 0 : index
    %c0_20 = arith.constant 0 : index
    %46 = vector.load %arg5[%c0_18, %c0_19, %c0_20] : memref<1x4x1xf32, #tpu.memory_space<vmem>>, vector<1x4x1xf32>
    %47 = vector.shape_cast %46 : vector<1x4x1xf32> to vector<4x1xf32>
    %48 = vector.shape_cast %45 : vector<4x1xf32> to vector<1x4x1xf32>
    tpu.vector_store %arg5[%c0_18, %c0_19, %c0_20], %48 {strides = array<i32>} : memref<1x4x1xf32, #tpu.memory_space<vmem>>, vector<1x4x1xf32>,
    %c0_21 = arith.constant 0 : index
    %c0_22 = arith.constant 0 : index
    %c0_23 = arith.constant 0 : index
    %49 = vector.load %arg6[%c0_21, %c0_22, %c0_23] : memref<1x4x1xf32, #tpu.memory_space<vmem>>, vector<1x4x1xf32>
    %50 = vector.shape_cast %49 : vector<1x4x1xf32> to vector<4x1xf32>
    %cst_24 = arith.constant dense<0.000000e+00> : vector<4xf32>
    %51 = vector.multi_reduction <add>, %33, %cst_24 [1] : vector<4x256xf32> to vector<4xf32>
    %52 = vector.shape_cast %51 : vector<4xf32> to vector<4x1xf32>
    %53 = arith.addf %50, %52 : vector<4x1xf32>
    %c0_25 = arith.constant 0 : index
    %c0_26 = arith.constant 0 : index
    %c0_27 = arith.constant 0 : index
    %54 = vector.load %arg6[%c0_25, %c0_26, %c0_27] : memref<1x4x1xf32, #tpu.memory_space<vmem>>, vector<1x4x1xf32>
    %55 = vector.shape_cast %54 : vector<1x4x1xf32> to vector<4x1xf32>
    %56 = vector.shape_cast %53 : vector<4x1xf32> to vector<1x4x1xf32>
    tpu.vector_store %arg6[%c0_25, %c0_26, %c0_27], %56 {strides = array<i32>} : memref<1x4x1xf32, #tpu.memory_space<vmem>>, vector<1x4x1xf32>,
    return
  }
  func.func @transform_0(%arg0: i32, %arg1: i32, %arg2: i32) -> (i32, i32, i32) {
    %c1_i32 = arith.constant 1 : i32
    %0 = arith.muli %arg1, %c1_i32 : i32
    %1 = arith.addi %0, %arg2 : i32
    %c0_i32 = arith.constant 0 : i32
    %c0_i32_0 = arith.constant 0 : i32
    return %arg0, %c0_i32, %1 : i32, i32, i32
  }
  func.func @transform_1(%arg0: i32, %arg1: i32, %arg2: i32) -> (i32, i32, i32) {
    %c1_i32 = arith.constant 1 : i32
    %0 = arith.muli %arg1, %c1_i32 : i32
    %1 = arith.addi %0, %arg2 : i32
    %c0_i32 = arith.constant 0 : i32
    %c0_i32_0 = arith.constant 0 : i32
    return %arg0, %c0_i32, %1 : i32, i32, i32
  }
  func.func @transform_2(%arg0: i32, %arg1: i32, %arg2: i32) -> (i32, i32, i32) {
    %c1_i32 = arith.constant 1 : i32
    %0 = arith.muli %arg0, %c1_i32 : i32
    %1 = arith.addi %0, %arg1 : i32
    %c0_i32 = arith.constant 0 : i32
    %c0_i32_0 = arith.constant 0 : i32
    %c0_i32_1 = arith.constant 0 : i32
    return %1, %c0_i32, %c0_i32_0 : i32, i32, i32
  }
  func.func @transform_3(%arg0: i32, %arg1: i32, %arg2: i32) -> (i32, i32, i32) {
    %c1_i32 = arith.constant 1 : i32
    %0 = arith.muli %arg0, %c1_i32 : i32
    %1 = arith.addi %0, %arg1 : i32
    %c0_i32 = arith.constant 0 : i32
    %c0_i32_0 = arith.constant 0 : i32
    %c0_i32_1 = arith.constant 0 : i32
    return %1, %c0_i32, %c0_i32_0 : i32, i32, i32
  }
}

</mosaic_0001>

<bundles_post_ra>
// kernel: tpu_custom_call.1
= control target key start
LH: loop header
LB: loop body
LE: loop exit
PB: predicated region body
PF: predicated region fallthrough
CT: control target
= control target key end

     0   :  { %9 = vsyncpa [#allocation3], 0  ;;  %s973_s0 = inlined_call_operand.hbm [shape: f32[2,4,256], index: 0, kind: input, shape index: {}]   ;;  %s974_s1 = inlined_call_operand.hbm [shape: s32[2,1,256], index: 1, kind: input, shape index: {}]   ;;  %s975_s2 = inlined_call_operand.vmem [shape: f32[2,4,1], index: 2, kind: output, shape index: {0}]   ;;  %s976_s3 = inlined_call_operand.vmem [shape: f32[2,4,1], index: 3, kind: output, shape index: {1}]  }
   0x1   :  { %11 = vsyncpa [#allocation3 + $0x1], 0 }
   0x2   :  { %12 = vsyncpa [#allocation5], 0 }
   0x3   :  { %14 = vsyncpa [#allocation5 + $0x1], 0  ;;  %s773_s12 = smov 0   ;;  %s775_s13 = smov 0  }
   0x4   :  { %s777_s14 = smov 0   ;;  %s779_s15 = smov 0  }
   0x5   :  { %s781_s16 = smov 0   ;;  %s783_s17 = smov 0  }
   0x6 LB: > { %s543_s18 = sadd.s32 4294967295, %s748_s17   ;;  %s39_s19 = sadd.s32 1, %s744_s16  ;;  %s748_s17 = sphi %s783_s17, %s20_s17   ;;  %s744_s16 = sphi %s781_s16, %s990_s16   ;;  %s740_s15 = sphi %s779_s15, %s989_s15   ;;  %s736_s14 = sphi %s777_s14, %s988_s14   ;;  %s732_s13 = sphi %s775_s13, %s987_s13   ;;  %s728_s12 = sphi %s773_s12, %s986_s12  }
   0x7   : > { %p41_p0 = scmp.ge.s32.totalorder %s39_s19, 2  ;;  %s50_s20 = sadd.s32 1, %s736_s14 }
   0x8   : > { %p57_p1 = scmp.ne.s32.totalorder %s736_s14, %s732_s13  ;;  %p58_p2 = scmp.eq.s32.totalorder %s748_s17, 0 }
   0x9   : > { %s992_s19 = smov (%p41_p0, %s39_s19), 0  ;;  %p63_p4 = scmp.ne.s32.totalorder %s732_s13, %s728_s12 }
   0xa   : > { %p809_p3 = por %p58_p2, %p57_p1  ;;  %s45_s22 = ssub.s32 %s744_s16, %s992_s19 }
   0xb   : > { %p64_p5 = scmp.eq.s32.totalorder %s543_s18, 0  ;;  %p48_p6 = scmp.eq.s32.totalorder %s45_s22, 0 }
   0xc   : > { %p573_p8 = scmp.lt.s32.totalorder %s748_s17, 2  ;;  %s825_s25 = sand.u32 1, %s736_s14  }
   0xd   : > { %p816_p7 = por %p64_p5, %p63_p4  ;;  %s560_s26 = sshll.u32 %s744_s16, 7 }
   0xe   : > { %s822_s24 = scalar_select %p48_p6, %s736_s14, %s50_s20  }
   0xf   : > { %s979_s23 = scalar_select %p816_p7, 1, 0 }
  0x10   : > { %s547_s27 = sshll.u32 %s825_s25, 3  ;;  %s832_s30 = scalar_lea.hbm %s973_s0, %s560_s26 }
  0x11   : > { %s177_s4 = scalar_lea.vmem [#allocation2], %s547_s27  ;;  %p836_p9 = pnand %p573_p8, %p809_p3 }
  0x12   : > { %s188_s5 = sshll.u32 %s177_s4, 4  ;;  %s174_s7 = scalar_lea.sflag [#allocation3], %s825_s25  ;;  %s840_s5 = int_to_ptr.vmem [resolvable:$true] %s188_s5 }
  0x13   : > { %s634_s8 = scalar_lea.hbm %s832_s30, 128  ;;  %p636_p13 = pneg %p836_p9 }
  0x14   : > { %p635_p12 = scmp.ne.s32.totalorder %s832_s30, %s634_s8  ;;  %s639_s11 = scalar_lea.hbm %s973_s0, 256 }
  0x15   : > { %p640_p2 = scmp.lt.u32.totalorder %s832_s30, %s973_s0  ;;  %p641_p3 = scmp.lt.u32.totalorder %s639_s11, %s634_s8 }
  0x16   : > { %p637_p0 = pnand %p636_p13, %p635_p12  ;;  %p643_p5 = scmp.lt.u32.totalorder %s634_s8, %s832_s30 }
  0x17   : > { %p642_p4 = por %p641_p3, %p640_p2 }
  0x18   : > { %p638_p1 = pneg %p637_p0 }
  0x19   : > { %p644_p6 = por %p643_p5, %p642_p4 }
  0x1b   : > { %p645_p8 = pnand %p644_p6, %p638_p1 }
  0x1d   : > { %648 = shalt.err (!%p645_p8)
}
  0x1e   : > { %s649_s20 = scalar_lea.vmem %s840_s5, 128  ;;  %s750_s21 = smov [#allocation2]  }
  0x1f   : > { %p650_p12 = scmp.ne.s32.totalorder %s840_s5, %s649_s20  ;;  %s654_s22 = sshll.u32 %s750_s21, 4  ;;  %s655_s22 = int_to_ptr.vmem [resolvable:$false] %s654_s22 }
  0x20   : > { %s656_s26 = scalar_lea.vmem %s655_s22, 256  ;;  %p657_p11 = scmp.lt.s32.totalorder %s840_s5, %s655_s22 }
  0x21   : > { %p652_p0 = pnand %p650_p12, %p636_p13  ;;  %p658_p2 = scmp.lt.s32.totalorder %s656_s26, %s649_s20 }
  0x23   : > { %p653_p10 = pneg %p652_p0  ;;  %p659_p3 = por %p658_p2, %p657_p11 }
  0x25   : > { %p660_p4 = pnand %p659_p3, %p653_p10 }
  0x27   : > { %663 = shalt.err (!%p660_p4)
}
  0x28   : > { %569 = dma.hbm_to_vmem [thread:$0]  (!%p836_p9), %s832_s30, 128, %s840_s5, %s174_s7  }
  0x29   : > { %p981_p1 = scmp.lt.s32.totalorder %s748_s17, 3  ;;  %p982_p5 = scmp.ge.s32.totalorder %s748_s17, 1 }
  0x2a   : > { %s550_s28 = sshll.u32 %s825_s25, 1  ;;  %s561_s29 = sshll.u32 %s744_s16, 5 }
  0x2b   : > { %p874_p6 = pnand %p982_p5, %p981_p1  ;;  %s883_s9 = scalar_lea.hbm %s974_s1, %s561_s29 }
  0x2c   : > { %s199_s10 = scalar_lea.vmem [#allocation4], %s550_s28  ;;  %s196_s30 = scalar_lea.sflag [#allocation5], %s825_s25 }
  0x2d   : > { %s983_s27 = scalar_select %p874_p6, 1, 0 }
  0x2e   : > { %s210_s11 = sshll.u32 %s199_s10, 4  ;;  %s664_s5 = scalar_lea.hbm %s883_s9, 32  ;;  %s211_s11 = int_to_ptr.vmem [resolvable:$true] %s210_s11 }
  0x2f   : > { %p665_p10 = scmp.ne.s32.totalorder %s883_s9, %s664_s5  ;;  %s669_s18 = scalar_lea.hbm %s974_s1, 64 }
  0x30   : > { %p670_p12 = scmp.lt.u32.totalorder %s883_s9, %s974_s1  ;;  %p671_p0 = scmp.lt.u32.totalorder %s669_s18, %s664_s5 }
  0x31   : > { %p667_p11 = pnand %p665_p10, %p636_p13  ;;  %p673_p3 = scmp.lt.u32.totalorder %s664_s5, %s883_s9 }
  0x32   : > { %p672_p2 = por %p671_p0, %p670_p12 }
  0x33   : > { %p668_p8 = pneg %p667_p11 }
  0x34   : > { %p674_p4 = por %p673_p3, %p672_p2 }
  0x36   : > { %p675_p1 = pnand %p674_p4, %p668_p8 }
  0x38   : > { %678 = shalt.err (!%p675_p1)
}
  0x39   : > { %s679_s25 = scalar_lea.vmem %s211_s11, 32  ;;  %s751_s22 = smov [#allocation4]  }
  0x3a   : > { %p680_p5 = scmp.ne.s32.totalorder %s211_s11, %s679_s25  ;;  %s684_s26 = sshll.u32 %s751_s22, 4  ;;  %s685_s26 = int_to_ptr.vmem [resolvable:$false] %s684_s26 }
  0x3b   : > { %s686_s28 = scalar_lea.vmem %s685_s26, 64  ;;  %p687_p7 = scmp.lt.s32.totalorder %s211_s11, %s685_s26 }
  0x3c   : > { %p682_p10 = pnand %p680_p5, %p636_p13  ;;  %p688_p6 = scmp.lt.s32.totalorder %s686_s28, %s679_s25 }
  0x3e   : > { %p683_p11 = pneg %p682_p10  ;;  %p689_p0 = por %p688_p6, %p687_p7 }
  0x40   : > { %p690_p12 = pnand %p689_p0, %p683_p11 }
  0x42   : > { %693 = shalt.err (!%p690_p12)
}
  0x43   : > { %572 = dma.hbm_to_vmem [thread:$0]  (!%p836_p9), %s883_s9, 32, %s211_s11, %s196_s30  }
  0x44   : > { %p984_p8 = scmp.ne.s32.totalorder %s983_s27, 0 }
  0x45   : > { %s221_s29 = sand.u32 (!%p984_p8), 1, %s732_s13   ;;  %p985_p13 = scmp.ne.s32.totalorder (!%p984_p8), %s979_s23, 0 }
  0x46   : > { %219 = sbr.rel (%p984_p8) target bundleno = 314 (0x13a), region = 28  ;;  %s554_s4 = sshll.u32 (!%p984_p8), %s221_s29, 3 }
  0x47   : > { %s222_s8 = scalar_lea.sflag (!%p984_p8), [#allocation3], %s221_s29  ;;  %s225_s10 = scalar_lea.vmem (!%p984_p8), [#allocation2], %s554_s4 }
  0x4d   : > { %719 = dma.done.wait (%p985_p13), %s222_s8, 128  }
  0x4e   : > { %721 = vsyncadd (%p985_p13), %s222_s8, 4294967168  ;;  %s555_s5 = sshll.u32 %s221_s29, 1  ;;  %s231_s7 = scalar_lea.sflag [#allocation5], %s221_s29 }
  0x4f   : > { %s912_s6 = scalar_lea.vmem [#allocation4], %s555_s5 }
  0x50   : > { %723 = dma.done.wait (%p985_p13), %s231_s7, 32  }
  0x51   : > { %725 = vsyncadd (%p985_p13), %s231_s7, 4294967264  ;;  %p272_p7 = scmp.lt.s32.totalorder %s740_s15, 1  ;;  %vm287_vm0 = vcmask 3072   ;;  %vm295_vm1 = vcmask 1043456   ;;  %v752_v0 = vmov 0.0   ;;  %v290_v1 = vld [vmem:[%s225_s10] sm:$0xff]  ;;  %v358_v36 = vlaneseq }
  0x52   : > { %v293_v2 = vcombine.high %v290_v1, %v290_v1  ;;  %v296_v3 = vsel %vm295_vm1, %v290_v1, -inf  ;;  %v291_v47 = vld [vmem:[%s912_s6] sm:$0x3] }
  0x53   : > { %s994_s15 = smov (!%p272_p7, %s740_s15), 1  ;;  %v297_v4 = vrot.slane %v296_v3, 4  ;;  %v359_v37 = vshrl.u32 %v358_v36, 7 }
  0x54   : > { %s556_s27 = sshll.u32 %s994_s15, 2  ;;  %v303_v5 = vsel %vm295_vm1, %v293_v2, -inf }
  0x55   : > { %s928_s30 = scalar_lea.vmem %s975_s2, %s556_s27  ;;  %v298_v6 = vmax.f32 %v296_v3, %v297_v4  ;;  %v304_v7 = vrot.slane %v303_v5, 4  ;;  %v362_v46 = vsub.s32 0, %v359_v37  ;;  %v366_v51 = vsub.s32 1, %v359_v37  ;;  %s281_s18 = scalar_lea.vmem %s976_s3, %s556_s27 }
  0x56   : > { %288 = vst.msk [vmem:[%s928_s30] sm:$0xf] %vm287_vm0, %v752_v0  ;;  %289 = vst.msk [vmem:[%s281_s18] sm:$0xf] %vm287_vm0, %v752_v0 }
  0x57   : > { %v299_v8 = vrot.slane %v298_v6, 2  ;;  %v305_v9 = vmax.f32 %v303_v5, %v304_v7  ;;  %v363_v54 = vrot.slane %v291_v47, %v362_v46  ;;  %v367_v56 = vrot.slane %v291_v47, %v366_v51 }
  0x59   : > { %v300_v10 = vmax.f32 %v298_v6, %v299_v8  ;;  %v306_v11 = vrot.slane %v305_v9, 2  ;;  %vm368_vm2 = vcmp.eq.s32.totalorder %v363_v54, %v359_v37  ;;  %vm369_vm3 = vcmp.eq.s32.totalorder %v367_v56, %v359_v37 }
  0x5a   : > { %v370_v60 = vsel %vm368_vm2, 1.0, %v752_v0  ;;  %v371_v63 = vsel %vm369_vm3, 1.0, %v752_v0 }
  0x5b   : > { %v301_v12 = vrot.slane %v300_v10, 1  ;;  %v307_v13 = vmax.f32 %v305_v9, %v306_v11  ;;  %v373_v3 = vadd.f32 1e-06, %v371_v63  ;;  %v393_v11 = vsel %vm295_vm1, %v371_v63, 0.0 }
  0x5d   : > { %v302_v14 = vmax.f32 %v300_v10, %v301_v12  ;;  %v308_v15 = vrot.slane %v307_v13, 1  ;;  %v392_v10 = vsel %vm295_vm1, %v370_v60, 0.0 }
  0x5f   : > { %v309_v16 = vmax.f32 %v307_v13, %v308_v15  ;;  %v394_v13 = vadd.f32 %v393_v11, %v392_v10 }
  0x61   : > { %v312_v17 = vcombine.low %v302_v14, %v309_v16  ;;  %v382_v14 = vld [vmem:[%s928_s30] sm:$0xf] }
  0x63   : > { %v314_v18 = vsub.f32 %v290_v1, %v312_v17  ;;  %v372_v1 = vadd.f32 1e-06, %v370_v60  ;;  %v391_v17 = vld [vmem:[%s281_s18] sm:$0xf] }
  0x65   : > { %v315_v19 = vmul.f32 1.442695, %v314_v18 }
  0x67   : > { %624 = vpow2.f32 %v315_v19 }
  0x71   : > { %v625_v20 = vpop.eup %624 }
  0x72   : > { %v318_v21 = vcombine.high %v625_v20, %v625_v20  ;;  %v320_v22 = vsel %vm295_vm1, %v625_v20, 0.0 }
  0x73   : > { %v321_v23 = vrot.slane %v320_v22, 4 }
  0x74   : > { %v327_v24 = vsel %vm295_vm1, %v318_v21, 0.0 }
  0x75   : > { %v322_v25 = vadd.f32 %v321_v23, %v320_v22  ;;  %v328_v26 = vrot.slane %v327_v24, 4 }
  0x77   : > { %v323_v27 = vrot.slane %v322_v25, 2  ;;  %v329_v28 = vadd.f32 %v328_v26, %v327_v24 }
  0x79   : > { %v324_v29 = vadd.f32 %v323_v27, %v322_v25  ;;  %v330_v30 = vrot.slane %v329_v28, 2 }
  0x7b   : > { %v325_v31 = vrot.slane %v324_v29, 1  ;;  %v331_v32 = vadd.f32 %v330_v30, %v329_v28 }
  0x7d   : > { %v326_v33 = vadd.f32 %v325_v31, %v324_v29  ;;  %v332_v34 = vrot.slane %v331_v32, 1 }
  0x7f   : > { %v333_v35 = vadd.f32 %v332_v34, %v331_v32  ;;  %626 = vrcp.f32 %v326_v33 }
  0x80   : > { %628 = vlog2.f32 %v326_v33 }
  0x81   : > { %630 = vrcp.f32 %v333_v35 }
  0x82   : > { %632 = vlog2.f32 %v333_v35 }
  0x89   : > { %v627_v38 = vpop.eup %626 }
  0x8a   : > { %v629_v39 = vpop.eup %628  ;;  %v336_v40 = vmul.f32 %v627_v38, %v326_v33 }
  0x8b   : > { %v631_v41 = vpop.eup %630  ;;  %v343_v45 = vmul.f32 0.6931472, %v629_v39 }
  0x8c   : > { %v633_v42 = vpop.eup %632  ;;  %v337_v43 = vmul.f32 %v631_v41, %v333_v35  ;;  %v338_v44 = vsub.f32 2.0, %v336_v40 }
  0x8d   : > { %v345_v48 = vmul.f32 0.6931472, %v633_v42 }
  0x8e   : > { %v339_v49 = vsub.f32 2.0, %v337_v43  ;;  %v340_v50 = vmul.f32 %v627_v38, %v338_v44 }
  0x8f   : > { %v354_v53 = vcombine.low %v343_v45, %v345_v48 }
  0x90   : > { %v341_v52 = vmul.f32 %v631_v41, %v339_v49 }
  0x91   : > { %v356_v58 = vsub.f32 %v314_v18, %v354_v53 }
  0x92   : > { %v348_v55 = vcombine.low %v340_v50, %v341_v52 }
  0x93   : > { %v357_v61 = vmax.f32 %v356_v58, -18.420681 }
  0x94   : > { %v350_v57 = vmul.f32 %v625_v20, %v348_v55 }
  0x96   : > { %v351_v59 = vadd.f32 1e-08, %v350_v57 }
  0x98   : > { %v374_v62 = vsub.f32 1.0, %v351_v59 }
  0x9a   : > { %v375_v2 = vmul.f32 %v374_v62, %v374_v62 }
  0x9c   : > { %v376_v4 = vmul.f32 %v375_v2, %v357_v61 }
  0x9e   : > { %v378_v5 = vcombine.high %v376_v4, %v376_v4  ;;  %v380_v6 = vmul.f32 %v376_v4, %v372_v1 }
  0xa0   : > { %v381_v7 = vmul.f32 %v378_v5, %v373_v3  ;;  %v383_v8 = vsel %vm295_vm1, %v380_v6, 0.0 }
  0xa2   : > { %v384_v9 = vsel %vm295_vm1, %v381_v7, 0.0 }
  0xa3   : > { %v385_v12 = vadd.f32 %v384_v9, %v383_v8 }
  0xa5   : > { %386 = vadd.xlane.f32.xlu0 %v385_v12 }
  0xa9   : > { %395 = vadd.xlane.f32.xlu0 %v394_v13 }
 0x132   : > { %v387_v15 = vpop.xlane.xlu0 %386 }
 0x133   : > { %v388_v16 = vadd.f32 %v387_v15, %v382_v14 }
 0x135   : > { %390 = vst.msk [vmem:[%s928_s30] sm:$0xf] %vm287_vm0, %v388_v16 }
 0x136   : > { %v396_v18 = vpop.xlane.xlu0 %395 }
 0x137   : > { %v397_v19 = vadd.f32 %v396_v18, %v391_v17 }
 0x139   : > { %398 = vst.msk [vmem:[%s281_s18] sm:$0xf] %vm287_vm0, %v397_v19 }
 0x13a PF: > { %s20_s17 = sadd.s32 1, %s748_s17   ;;  %s986_s12 = smov %s732_s13 }
 0x13b   : > { %p17_p9 = scmp.ge.s32.totalorder %s20_s17, 4   ;;  %s987_s13 = smov %s736_s14 }
 0x13c   : > { %s988_s14 = smov %s822_s24  ;;  %s989_s15 = smov %s744_s16 }
 0x13d   : > { %s990_s16 = smov %s992_s19  ;;  %19 = sbr.rel (!%p17_p9) target bundleno = 6 (0x6), region = 97 }
 0x144   :  { %438 = vsyncpa [#allocation3], 1 }
 0x145   :  { %440 = vsyncpa [#allocation3 + $0x1], 1 }
 0x146   :  { %441 = vsyncpa [#allocation5], 1 }
 0x147   :  { %443 = vsyncpa [#allocation5 + $0x1], 1 }

</bundles_post_ra>
